<compile_context>
chip_gen: v7x
topology: tpu7x:2x2x1
jax: 0.10.0
libtpu: 0.0.40
codegen_flags: <defaults>
</compile_context>

<pallas_src>
import jax
import jax.numpy as jnp
from jax.experimental import pallas as pl
from jax.experimental.pallas import tpu as pltpu


def net_kernel(x_ref, wb_ref, o_ref):
    """One batch tile of the fused affine map.

    x_ref : (tile_b, 3) f32 VMEM  -- input rows for this tile (PyTorch layout)
    wb_ref: (4,)        f32 SMEM  -- packed [w0, w1, w2, b]
    o_ref : (1, tile_b) f32 VMEM  -- lane-dense output row for this tile
    """
    w0 = wb_ref[0]
    w1 = wb_ref[1]
    w2 = wb_ref[2]
    b = wb_ref[3]

    # Per-tile transpose so the batch sits on the lane axis (XLU work that
    # overlaps with the HBM DMAs); the FMA then runs on the VPU and the store
    # is a single lane-dense row.
    xt = jnp.transpose(x_ref[...])  # (3, tile_b)
    y = w0 * xt[0:1, :] + w1 * xt[1:2, :] + w2 * xt[2:3, :] + b
    o_ref[...] = y.astype(o_ref.dtype)


def net_forward(x, w1, b1, w2, b2, *, tile_b=4096):
    """x: [B, 3]; w1: [2, 3]; b1: [2]; w2: [1, 2]; b2: [1] -> y: [B, 1]."""
    B = x.shape[0]

    # Exact fusion of the two affine layers (done once, outside the kernel):
    #   y = (x @ w1.T + b1) @ w2.T + b2 = x @ (w2 @ w1).T + (b1 @ w2.T + b2)
    w_eff = (w2 @ w1).reshape(3)
    b_eff = (b1 @ w2.T + b2).reshape(1)
    wb = jnp.concatenate([w_eff, b_eff]).astype(jnp.float32)  # (4,) SMEM scalars

    x = x.astype(jnp.float32)

    # Small-batch path: one block covering the whole array (block == array dims
    # is always legal). Large-batch path: 128-multiple lane-dense tiles; the
    # final partial block is padded/masked by Pallas automatically.
    if B < tile_b:
        tile_b = B
    grid = (pl.cdiv(B, tile_b),)

    y_row = pl.pallas_call(
        net_kernel,
        out_shape=jax.ShapeDtypeStruct((1, B), jnp.float32),
        grid=grid,
        in_specs=[
            pl.BlockSpec((tile_b, 3), lambda i: (i, 0)),               # x tile in VMEM
            pl.BlockSpec(memory_space=pltpu.MemorySpace.SMEM),         # packed w+b
        ],
        out_specs=pl.BlockSpec((1, tile_b), lambda i: (0, i)),
        compiler_params=pltpu.CompilerParams(
            dimension_semantics=("parallel",)),                        # megacore on v7x
    )(x, wb)

    # Back to PyTorch's [N, out_features] = (B, 1) layout (free row-major bitcast).
    return y_row.reshape(B, 1)


def net_reference(x, w1, b1, w2, b2):
    h = x @ w1.T + b1
    return h @ w2.T + b2


if __name__ == "__main__":
    key = jax.random.PRNGKey(0)
    kx, k1, k2, k3, k4 = jax.random.split(key, 5)

    B = 8  # batch size
    x = jax.random.normal(kx, (B, 3), dtype=jnp.float32)

    # Deterministic parameter init (uniform, like PyTorch's default Linear init scale).
    w1 = jax.random.uniform(k1, (2, 3), jnp.float32, -1.0 / 3**0.5, 1.0 / 3**0.5)
    b1 = jax.random.uniform(k2, (2,), jnp.float32, -1.0 / 3**0.5, 1.0 / 3**0.5)
    w2 = jax.random.uniform(k3, (1, 2), jnp.float32, -1.0 / 2**0.5, 1.0 / 2**0.5)
    b2 = jax.random.uniform(k4, (1,), jnp.float32, -1.0 / 2**0.5, 1.0 / 2**0.5)

    y = net_forward(x, w1, b1, w2, b2)
    jax.block_until_ready(y)

    y_ref = net_reference(x, w1, b1, w2, b2)
    assert y.shape == (B, 1)
    assert jnp.allclose(y, y_ref, atol=1e-5, rtol=1e-5), "mismatch vs reference"

    print("KERNEL_OK")
</pallas_src>

<mosaic_0001>
module attributes {stable_mosaic.version = 11 : i64} {
  func.func @net_kernel(%arg0: i32, %arg1: memref<8x3xf32, #tpu.memory_space<vmem>>, %arg2: memref<4xf32, #tpu.memory_space<smem>>, %arg3: memref<1x8xf32, #tpu.memory_space<vmem>>) attributes {dimension_semantics = [#tpu.dimension_semantics<parallel>], iteration_bounds = array<i64: 1>, scalar_prefetch = 0 : i64, scratch_operands = 0 : i64, tpu.core_type = #tpu.core_type<tc>, window_params = [{transform_indices = @transform_0, window_bounds = array<i64: 8, 3>}, {transform_indices = @transform_1, window_bounds = array<i64: 4>}, {transform_indices = @transform_2, window_bounds = array<i64: 1, 8>}]} {
    %c0 = arith.constant 0 : index
    %0 = memref.load %arg2[%c0] : memref<4xf32, #tpu.memory_space<smem>>
    %c1 = arith.constant 1 : index
    %1 = memref.load %arg2[%c1] : memref<4xf32, #tpu.memory_space<smem>>
    %c2 = arith.constant 2 : index
    %2 = memref.load %arg2[%c2] : memref<4xf32, #tpu.memory_space<smem>>
    %c3 = arith.constant 3 : index
    %3 = memref.load %arg2[%c3] : memref<4xf32, #tpu.memory_space<smem>>
    %c0_0 = arith.constant 0 : index
    %c0_1 = arith.constant 0 : index
    %4 = vector.load %arg1[%c0_0, %c0_1] : memref<8x3xf32, #tpu.memory_space<vmem>>, vector<8x3xf32>
    %5 = tpu.transpose %4, [1, 0] : vector<8x3xf32> -> vector<3x8xf32>
    %6 = vector.extract_strided_slice %5 {offsets = [0, 0], sizes = [1, 8], strides = [1, 1]} : vector<3x8xf32> to vector<1x8xf32>
    %7 = vector.broadcast %0 : f32 to vector<1x8xf32>
    %8 = arith.mulf %7, %6 : vector<1x8xf32>
    %9 = vector.extract_strided_slice %5 {offsets = [1, 0], sizes = [1, 8], strides = [1, 1]} : vector<3x8xf32> to vector<1x8xf32>
    %10 = vector.broadcast %1 : f32 to vector<1x8xf32>
    %11 = arith.mulf %10, %9 : vector<1x8xf32>
    %12 = arith.addf %8, %11 : vector<1x8xf32>
    %13 = vector.extract_strided_slice %5 {offsets = [2, 0], sizes = [1, 8], strides = [1, 1]} : vector<3x8xf32> to vector<1x8xf32>
    %14 = vector.broadcast %2 : f32 to vector<1x8xf32>
    %15 = arith.mulf %14, %13 : vector<1x8xf32>
    %16 = arith.addf %12, %15 : vector<1x8xf32>
    %17 = vector.broadcast %3 : f32 to vector<1x8xf32>
    %18 = arith.addf %16, %17 : vector<1x8xf32>
    %c0_2 = arith.constant 0 : index
    %c0_3 = arith.constant 0 : index
    %19 = vector.load %arg3[%c0_2, %c0_3] : memref<1x8xf32, #tpu.memory_space<vmem>>, vector<1x8xf32>
    tpu.vector_store %arg3[%c0_2, %c0_3], %18 {strides = array<i32>} : memref<1x8xf32, #tpu.memory_space<vmem>>, vector<1x8xf32>,
    return
  }
  func.func @transform_0(%arg0: i32) -> (i32, i32) {
    %c0_i32 = arith.constant 0 : i32
    %c0_i32_0 = arith.constant 0 : i32
    return %arg0, %c0_i32 : i32, i32
  }
  func.func @transform_1(%arg0: i32) -> i32 {
    %c0_i32 = arith.constant 0 : i32
    %c0_i32_0 = arith.constant 0 : i32
    return %c0_i32 : i32
  }
  func.func @transform_2(%arg0: i32) -> (i32, i32) {
    %c0_i32 = arith.constant 0 : i32
    %c0_i32_0 = arith.constant 0 : i32
    return %c0_i32, %arg0 : i32, i32
  }
}

</mosaic_0001>

<bundles_post_ra>
// kernel: tpu_custom_call.1
= control target key start
LH: loop header
LB: loop body
LE: loop exit
PB: predicated region body
PF: predicated region fallthrough
CT: control target
= control target key end

     0   :  { %7 = vsyncpa [#allocation4], 0  ;;  %s174_s0 = inlined_call_operand.vmem [shape: f32[8,3], index: 0, kind: input, shape index: {}]   ;;  %s175_s1 = inlined_call_operand.vmem [shape: f32[4], index: 1, kind: input, shape index: {}]   ;;  %s176_s2 = inlined_call_operand.hbm [shape: f32[1,8], index: 2, kind: output, shape index: {}]  }
   0x1   :  { %8 = vsyncpa [#allocation3], 0  ;;  %s17_s11 = sshll.u32 %s175_s1, 4  ;;  %s18_s11 = int_to_ptr.vmem [resolvable:$true] %s17_s11 }
   0x2   :  { %s101_s12 = scalar_lea.vmem %s18_s11, 16  ;;  %p106_p1 = scmp.lt.s32.totalorder %s18_s11, %s18_s11 }
   0x3   :  { %p102_p0 = scmp.ne.s32.totalorder %s18_s11, %s101_s12  ;;  %p107_p2 = scmp.lt.s32.totalorder %s101_s12, %s101_s12 }
   0x5   :  { %p108_p3 = por %p107_p2, %p106_p1 }
   0x7   :  { %p109_p4 = pnand %p108_p3, %p102_p0 }
   0x9   :  { %112 = shalt.err (!%p109_p4)
}
   0xa   :  { %s139_s13 = smov [#allocation2]  }
   0xb   :  { %20 = dma.vmem_to_smem %s18_s11, 16, %s139_s13, [#allocation4]  }
   0xc   :  { %135 = dma.done.wait [#allocation4], 16  }
   0xd   :  { %136 = vsyncadd [#allocation4], 4294967280 }
   0xe   :  { %24 = sfence }
   0xf   :  { %v29_v0 = vld [vmem:[%s174_s0] sm:$0xff]  ;;  %s95_s16 = sld [smem:[#allocation2 + $0x1]]  ;;  %s96_s1 = sld [smem:[#allocation2 + $0x2]]  ;;  %vm78_vm0 = vcmask 57344  }
  0x10   :  { %30 = vxpose.xlu0.b32.start.end [1/1] (short) (narrow) %v29_v0, 8  ;;  %s25_s17 = sld [smem:[#allocation2]]  ;;  %s97_s18 = sld [smem:[#allocation2 + $0x3]] }
  0x11   :  { %s140_s19 = smov [#allocation5]  }
  0x12   :  { %s86_s20 = sshll.u32 %s140_s19, 4  ;;  %s87_s20 = int_to_ptr.vmem [resolvable:$true] %s86_s20 }
  0x13   :  { %s113_s0 = scalar_lea.vmem %s87_s20, 16  ;;  %s117_s21 = scalar_lea.vmem %s87_s20, 32 }
  0x14   :  { %p114_p5 = scmp.ne.s32.totalorder %s87_s20, %s113_s0  ;;  %p118_p6 = scmp.lt.s32.totalorder %s87_s20, %s87_s20 }
  0x15   :  { %v64_v1 = vstv %s95_s16  ;;  %v70_v2 = vstv %s96_s1  ;;  %p119_p7 = scmp.lt.s32.totalorder %s117_s21, %s113_s0 }
  0x16   :  { %v62_v4 = vstv %s25_s17  ;;  %v76_v11 = vstv %s97_s18 }
  0x17   :  { %p120_p8 = por %p119_p7, %p118_p6 }
  0x19   :  { %p121_p9 = pnand %p120_p8, %p114_p5 }
  0x90   :  { %v46_v3 = vpop.trf.xlu0 }
  0x91   :  { %v65_v5 = vmul.f32 %v64_v1, %v46_v3  ;;  %v71_v6 = vmul.f32 %v70_v2, %v46_v3  ;;  %v63_v7 = vmul.f32 %v62_v4, %v46_v3 }
  0x93   :  { %v67_v8 = vrot.slane %v65_v5, 1  ;;  %v73_v10 = vrot.slane %v71_v6, 2 }
  0x95   :  { %v69_v9 = vadd.f32 %v67_v8, %v63_v7 }
  0x97   :  { %v75_v12 = vadd.f32 %v73_v10, %v69_v9 }
  0x99   :  { %v77_v13 = vadd.f32 %v76_v11, %v75_v12 }
  0x9b   :  { %79 = vst.msk [vmem:[#allocation5] sm:$0x1] %vm78_vm0, %v77_v13 }
  0x9c   :  { %124 = shalt.err (!%p121_p9)
}
  0x9d   :  { %s125_s24 = scalar_lea.hbm %s176_s2, 16 }
  0x9e   :  { %p126_p10 = scmp.ne.s32.totalorder %s176_s2, %s125_s24  ;;  %p129_p11 = scmp.lt.u32.totalorder %s125_s24, %s176_s2 }
  0xa0   :  { %p131_p12 = pnand %p129_p11, %p126_p10 }
  0xa2   :  { %134 = shalt.err (!%p131_p12)
}
  0xa3   :  { %89 = dma.vmem_to_hbm [thread:$0]  %s87_s20, 16, %s176_s2, [#allocation3]  }
  0xa4   :  { %137 = dma.done.wait [#allocation3], 16  }
  0xa5   :  { %138 = vsyncadd [#allocation3], 4294967280 }
  0xa6   :  { %93 = vsyncpa [#allocation3], 1 }
  0xa7   :  { %94 = vsyncpa [#allocation4], 1 }

</bundles_post_ra>
